<compile_context>
chip_gen: v7x
topology: tpu7x:2x2x1
jax: 0.10.0
libtpu: 0.0.40
codegen_flags: <defaults>
</compile_context>

<pallas_src>
import functools

import jax
import jax.numpy as jnp
from jax import lax
from jax.experimental import pallas as pl
from jax.experimental.pallas import tpu as pltpu


def _round_up(x, m):
    return (x + m - 1) // m * m


def _point_matching_kernel(score_ref, src_mask_ref, tgt_mask_ref, corr_ref, *,
                           k, mutual, threshold, tb):
    """One (TB, K, K) block: per-batch loop, each iteration a (K, K) slab."""

    def one_batch(b, carry):
        s = jnp.exp(score_ref[b].astype(jnp.float32))    # (K, K) f32
        rmask = src_mask_ref[b]                          # (K, 1) f32 in {0, 1}
        cmask = tgt_mask_ref[b]                          # (1, K) f32 in {0, 1}
        valid = (rmask * cmask) > 0.5                    # (K, K) bool
        masked = jnp.where(valid, s, 0.0)                # masked_fill(~mask, 0)

        # --- row-wise top-k via iterative max suppression (k small, static).
        # Exact for distinct values; ties at the k-th value may keep extras
        # (torch.topk breaks ties arbitrarily).
        work = masked
        kth_row = jnp.max(work, axis=1, keepdims=True)
        for _ in range(k - 1):
            work = jnp.where(work >= kth_row, -1.0, work)
            kth_row = jnp.max(work, axis=1, keepdims=True)
        row_sel = masked >= kth_row

        # --- column-wise top-k ------------------------------------------------
        work = masked
        kth_col = jnp.max(work, axis=0, keepdims=True)
        for _ in range(k - 1):
            work = jnp.where(work >= kth_col, -1.0, work)
            kth_col = jnp.max(work, axis=0, keepdims=True)
        col_sel = masked >= kth_col

        if mutual:
            sel = jnp.logical_and(row_sel, col_sel)
        else:
            sel = jnp.logical_or(row_sel, col_sel)
        corr = jnp.logical_and(sel, masked > threshold)
        corr = jnp.logical_and(corr, valid)

        corr_ref[b] = corr.astype(jnp.int8)
        return carry

    lax.fori_loop(0, tb, one_batch, 0)


def _choose_tb(batch, K, score_itemsize):
    """Batch elements per block, sized against padded (8,128)-tiled VMEM."""
    ks = _round_up(K, 8)
    kl = _round_up(K, 128)
    score_b = ks * kl * max(int(score_itemsize), 4)      # score block (f32-ish)
    srcm_b = ks * 128 * 4                                # (K, 1) f32, lane-pad
    tgtm_b = 8 * kl * 4                                  # (1, K) f32
    corr_b = _round_up(K, 32) * kl                       # (K, K) int8
    per_elem = score_b + srcm_b + tgtm_b + corr_b
    # ~1 MiB of logical score data per block, capped so double-buffered padded
    # blocks stay <= ~12 MiB (safe for v5e/v6e/v7x scoped-VMEM limits).
    tb = min(max(1, (1 << 20) // max(1, K * K * int(score_itemsize))),
             max(1, (12 << 20) // (2 * per_elem)))
    return max(1, min(tb, batch))


def point_matching_forward(src_knn_points, tgt_knn_points, src_knn_masks,
                           tgt_knn_masks, src_knn_indices, tgt_knn_indices,
                           score_mat, global_scores, *, k, mutual=True,
                           confidence_threshold=0.05, use_dustbin=False,
                           use_global_score=False):
    # TODO(synk): use_dustbin=True ((B, K+1, K+1) score matrix with dustbin
    # row/column slicing) is not supported in this kernel.
    assert not use_dustbin, "use_dustbin=True not supported in this kernel"

    B, K = src_knn_masks.shape
    assert score_mat.shape == (B, K, K)

    tb = _choose_tb(B, K, jnp.dtype(score_mat.dtype).itemsize)
    b_pad = _round_up(B, tb)
    grid = (b_pad // tb,)

    # Keep the caller's score dtype (bf16 stays bf16; cast happens in-kernel).
    score_in = score_mat
    # TODO(synk): (K, 1) row-mask blocks waste lanes in VMEM; could be packed
    # tighter, but their HBM traffic is negligible (K vs K*K per batch element).
    src_mask_f = src_knn_masks.astype(jnp.float32).reshape(B, K, 1)
    tgt_mask_f = tgt_knn_masks.astype(jnp.float32).reshape(B, 1, K)

    if b_pad != B:
        pad = b_pad - B
        score_in = jnp.pad(score_in, ((0, pad), (0, 0), (0, 0)))
        src_mask_f = jnp.pad(src_mask_f, ((0, pad), (0, 0), (0, 0)))
        tgt_mask_f = jnp.pad(tgt_mask_f, ((0, pad), (0, 0), (0, 0)))

    kernel = functools.partial(
        _point_matching_kernel, k=k, mutual=mutual,
        threshold=float(confidence_threshold), tb=tb)

    corr_mat = pl.pallas_call(
        kernel,
        out_shape=jax.ShapeDtypeStruct((b_pad, K, K), jnp.int8),
        grid=grid,
        in_specs=[
            pl.BlockSpec((tb, K, K), lambda g: (g, 0, 0)),   # scores
            pl.BlockSpec((tb, K, 1), lambda g: (g, 0, 0)),   # src (row) masks
            pl.BlockSpec((tb, 1, K), lambda g: (g, 0, 0)),   # tgt (col) masks
        ],
        out_specs=pl.BlockSpec((tb, K, K), lambda g: (g, 0, 0)),
        compiler_params=pltpu.CompilerParams(
            dimension_semantics=("parallel",),
            vmem_limit_bytes=32 * 1024 * 1024),
    )(score_in, src_mask_f, tgt_mask_f)

    # --- glue: torch.nonzero-style gather with a static upper bound ----------
    # At most ~k selections per row (mutual) / row+column (non-mutual); 2x
    # slack covers exact ties at the k-th value.  num_corr lets callers detect
    # (pathological) saturation.
    # TODO(synk): dynamic-length nonzero is not representable with static
    # shapes; return padded correspondences + validity mask + count instead.
    per_batch_cap = K * k if mutual else 2 * K * k
    max_corr = max(1, min(B * K * K, 2 * B * per_batch_cap))

    b_idx, s_idx, t_idx = jnp.nonzero(corr_mat, size=max_corr, fill_value=-1)
    valid = b_idx >= 0
    bg = jnp.where(valid, b_idx, 0)
    sg = jnp.where(valid, s_idx, 0)
    tg = jnp.where(valid, t_idx, 0)

    src_corr_indices = src_knn_indices[bg, sg]
    tgt_corr_indices = tgt_knn_indices[bg, tg]
    src_corr_points = src_knn_points[bg, sg]
    tgt_corr_points = tgt_knn_points[bg, tg]

    # Reference: corr_scores = (exp(score) * [global_score]) at corr positions.
    corr_scores = jnp.exp(score_mat[bg, sg, tg].astype(jnp.float32))
    if use_global_score:
        corr_scores = corr_scores * global_scores[bg].astype(jnp.float32)
    corr_scores = jnp.where(valid, corr_scores, 0.0)
    num_corr = jnp.sum(valid.astype(jnp.int32))

    return (src_corr_points, tgt_corr_points, src_corr_indices,
            tgt_corr_indices, corr_scores, valid, num_corr)


if __name__ == "__main__":
    key = jax.random.PRNGKey(0)
    B, K = 4, 8          # batch of patch correspondences, K knn points per patch
    N_src, N_tgt = 64, 64
    ks = jax.random.split(key, 8)

    src_knn_points = jax.random.normal(ks[0], (B, K, 3), dtype=jnp.float32)
    tgt_knn_points = jax.random.normal(ks[1], (B, K, 3), dtype=jnp.float32)
    src_knn_masks = jax.random.uniform(ks[2], (B, K)) > 0.2
    tgt_knn_masks = jax.random.uniform(ks[3], (B, K)) > 0.2
    src_knn_indices = jax.random.randint(ks[4], (B, K), 0, N_src, dtype=jnp.int32)
    tgt_knn_indices = jax.random.randint(ks[5], (B, K), 0, N_tgt, dtype=jnp.int32)
    # log-likelihood score matrix (B, K, K)
    score_mat = jax.random.normal(ks[6], (B, K, K), dtype=jnp.float32) - 1.0
    global_scores = jax.random.uniform(ks[7], (B,), dtype=jnp.float32)

    outs = point_matching_forward(
        src_knn_points, tgt_knn_points, src_knn_masks, tgt_knn_masks,
        src_knn_indices, tgt_knn_indices, score_mat, global_scores,
        k=2, mutual=True, confidence_threshold=0.05,
        use_dustbin=False, use_global_score=False)

    outs = jax.block_until_ready(outs)
    (src_corr_pts, tgt_corr_pts, src_corr_idx, tgt_corr_idx,
     corr_scores, valid, num_corr) = outs

    n = int(num_corr)  # trim the padded correspondence lists to the true count
    src_corr_pts = src_corr_pts[:n]
    tgt_corr_pts = tgt_corr_pts[:n]
    src_corr_idx = src_corr_idx[:n]
    tgt_corr_idx = tgt_corr_idx[:n]
    corr_scores = corr_scores[:n]

    assert src_corr_pts.shape == (n, 3)
    assert tgt_corr_pts.shape == (n, 3)
    assert corr_scores.shape == (n,)
    print("KERNEL_OK")
</pallas_src>

<mosaic_0001>
module attributes {stable_mosaic.version = 11 : i64} {
  func.func @_point_matching_kernel(%arg0: i32, %arg1: memref<4x8x8xf32, #tpu.memory_space<vmem>>, %arg2: memref<4x8x1xf32, #tpu.memory_space<vmem>>, %arg3: memref<4x1x8xf32, #tpu.memory_space<vmem>>, %arg4: memref<4x8x8xi8, #tpu.memory_space<vmem>>) attributes {dimension_semantics = [#tpu.dimension_semantics<parallel>], iteration_bounds = array<i64: 1>, scalar_prefetch = 0 : i64, scratch_operands = 0 : i64, tpu.core_type = #tpu.core_type<tc>, window_params = [{transform_indices = @transform_0, window_bounds = array<i64: 4, 8, 8>}, {transform_indices = @transform_1, window_bounds = array<i64: 4, 8, 1>}, {transform_indices = @transform_2, window_bounds = array<i64: 4, 1, 8>}, {transform_indices = @transform_3, window_bounds = array<i64: 4, 8, 8>}]} {
    %c0_i32 = arith.constant 0 : i32
    %c4_i32 = arith.constant 4 : i32
    %0 = arith.addi %c0_i32, %c4_i32 : i32
    %c1_i32 = arith.constant 1 : i32
    scf.for %arg5 = %c0_i32 to %0 step %c1_i32  : i32 {
      %1 = arith.index_cast %arg5 : i32 to index
      %c0 = arith.constant 0 : index
      %c0_1 = arith.constant 0 : index
      %2 = vector.load %arg1[%1, %c0, %c0_1] : memref<4x8x8xf32, #tpu.memory_space<vmem>>, vector<1x8x8xf32>
      %3 = vector.shape_cast %2 : vector<1x8x8xf32> to vector<8x8xf32>
      %4 = math.exp %3 : vector<8x8xf32>
      %5 = arith.index_cast %arg5 : i32 to index
      %c0_2 = arith.constant 0 : index
      %c0_3 = arith.constant 0 : index
      %6 = vector.load %arg2[%5, %c0_2, %c0_3] : memref<4x8x1xf32, #tpu.memory_space<vmem>>, vector<1x8x1xf32>
      %7 = vector.shape_cast %6 : vector<1x8x1xf32> to vector<8x1xf32>
      %8 = arith.index_cast %arg5 : i32 to index
      %c0_4 = arith.constant 0 : index
      %c0_5 = arith.constant 0 : index
      %9 = vector.load %arg3[%8, %c0_4, %c0_5] : memref<4x1x8xf32, #tpu.memory_space<vmem>>, vector<1x1x8xf32>
      %10 = vector.shape_cast %9 : vector<1x1x8xf32> to vector<1x8xf32>
      %11 = vector.broadcast %7 : vector<8x1xf32> to vector<8x8xf32>
      %12 = vector.broadcast %10 : vector<1x8xf32> to vector<8x8xf32>
      %13 = arith.mulf %11, %12 : vector<8x8xf32>
      %cst = arith.constant 5.000000e-01 : f32
      %14 = vector.broadcast %cst : f32 to vector<8x8xf32>
      %15 = arith.cmpf ogt, %13, %14 : vector<8x8xf32>
      %cst_6 = arith.constant 0.000000e+00 : f32
      %16 = vector.broadcast %cst_6 : f32 to vector<8x8xf32>
      %17 = arith.select %15, %4, %16 : vector<8x8xi1>, vector<8x8xf32>
      %cst_7 = arith.constant dense<0xFF800000> : vector<8xf32>
      %18 = vector.multi_reduction <maximumf>, %17, %cst_7 [1] : vector<8x8xf32> to vector<8xf32>
      %19 = vector.shape_cast %18 : vector<8xf32> to vector<8x1xf32>
      %20 = vector.broadcast %19 : vector<8x1xf32> to vector<8x8xf32>
      %21 = arith.cmpf oge, %17, %20 : vector<8x8xf32>
      %cst_8 = arith.constant -1.000000e+00 : f32
      %22 = vector.broadcast %cst_8 : f32 to vector<8x8xf32>
      %23 = arith.select %21, %22, %17 : vector<8x8xi1>, vector<8x8xf32>
      %cst_9 = arith.constant dense<0xFF800000> : vector<8xf32>
      %24 = vector.multi_reduction <maximumf>, %23, %cst_9 [1] : vector<8x8xf32> to vector<8xf32>
      %25 = vector.shape_cast %24 : vector<8xf32> to vector<8x1xf32>
      %26 = vector.broadcast %25 : vector<8x1xf32> to vector<8x8xf32>
      %27 = arith.cmpf oge, %17, %26 : vector<8x8xf32>
      %cst_10 = arith.constant dense<0xFF800000> : vector<8xf32>
      %28 = vector.multi_reduction <maximumf>, %17, %cst_10 [0] : vector<8x8xf32> to vector<8xf32>
      %29 = vector.shape_cast %28 : vector<8xf32> to vector<1x8xf32>
      %30 = vector.broadcast %29 : vector<1x8xf32> to vector<8x8xf32>
      %31 = arith.cmpf oge, %17, %30 : vector<8x8xf32>
      %cst_11 = arith.constant -1.000000e+00 : f32
      %32 = vector.broadcast %cst_11 : f32 to vector<8x8xf32>
      %33 = arith.select %31, %32, %17 : vector<8x8xi1>, vector<8x8xf32>
      %cst_12 = arith.constant dense<0xFF800000> : vector<8xf32>
      %34 = vector.multi_reduction <maximumf>, %33, %cst_12 [0] : vector<8x8xf32> to vector<8xf32>
      %35 = vector.shape_cast %34 : vector<8xf32> to vector<1x8xf32>
      %36 = vector.broadcast %35 : vector<1x8xf32> to vector<8x8xf32>
      %37 = arith.cmpf oge, %17, %36 : vector<8x8xf32>
      %38 = arith.andi %27, %37 : vector<8x8xi1>
      %cst_13 = arith.constant 5.000000e-02 : f32
      %39 = vector.broadcast %cst_13 : f32 to vector<8x8xf32>
      %40 = arith.cmpf ogt, %17, %39 : vector<8x8xf32>
      %41 = arith.andi %38, %40 : vector<8x8xi1>
      %42 = arith.andi %41, %15 : vector<8x8xi1>
      %43 = arith.extui %42 : vector<8x8xi1> to vector<8x8xi8>
      %44 = arith.index_cast %arg5 : i32 to index
      %c0_14 = arith.constant 0 : index
      %c0_15 = arith.constant 0 : index
      %45 = vector.load %arg4[%44, %c0_14, %c0_15] : memref<4x8x8xi8, #tpu.memory_space<vmem>>, vector<1x8x8xi8>
      %46 = vector.shape_cast %45 : vector<1x8x8xi8> to vector<8x8xi8>
      %47 = vector.shape_cast %43 : vector<8x8xi8> to vector<1x8x8xi8>
      tpu.vector_store %arg4[%44, %c0_14, %c0_15], %47 {strides = array<i32>} : memref<4x8x8xi8, #tpu.memory_space<vmem>>, vector<1x8x8xi8>,
    }
    %c4_i32_0 = arith.constant 4 : i32
    return
  }
  func.func @transform_0(%arg0: i32) -> (i32, i32, i32) {
    %c0_i32 = arith.constant 0 : i32
    %c0_i32_0 = arith.constant 0 : i32
    %c0_i32_1 = arith.constant 0 : i32
    return %arg0, %c0_i32, %c0_i32_0 : i32, i32, i32
  }
  func.func @transform_1(%arg0: i32) -> (i32, i32, i32) {
    %c0_i32 = arith.constant 0 : i32
    %c0_i32_0 = arith.constant 0 : i32
    %c0_i32_1 = arith.constant 0 : i32
    return %arg0, %c0_i32, %c0_i32_0 : i32, i32, i32
  }
  func.func @transform_2(%arg0: i32) -> (i32, i32, i32) {
    %c0_i32 = arith.constant 0 : i32
    %c0_i32_0 = arith.constant 0 : i32
    %c0_i32_1 = arith.constant 0 : i32
    return %arg0, %c0_i32, %c0_i32_0 : i32, i32, i32
  }
  func.func @transform_3(%arg0: i32) -> (i32, i32, i32) {
    %c0_i32 = arith.constant 0 : i32
    %c0_i32_0 = arith.constant 0 : i32
    %c0_i32_1 = arith.constant 0 : i32
    return %arg0, %c0_i32, %c0_i32_0 : i32, i32, i32
  }
}

</mosaic_0001>

<bundles_post_ra>
// kernel: tpu_custom_call.1
= control target key start
LH: loop header
LB: loop body
LE: loop exit
PB: predicated region body
PF: predicated region fallthrough
CT: control target
= control target key end

     0   :  { %8 = vsyncpa [#allocation3], 0  ;;  %s185_s12 = smov 0   ;;  %s222_s0 = inlined_call_operand.vmem [shape: f32[4,8,8], index: 0, kind: input, shape index: {}]   ;;  %s223_s1 = inlined_call_operand.vmem [shape: f32[4,8,1], index: 1, kind: input, shape index: {}]   ;;  %s224_s2 = inlined_call_operand.vmem [shape: f32[4,1,8], index: 2, kind: input, shape index: {}]   ;;  %s225_s3 = inlined_call_operand.hbm [shape: s8[4,8,8], index: 3, kind: output, shape index: {}]  }
   0x1 LB: > { %v161_v0 = vmov 0   ;;  %s111_s13 = sshll.u32 %s159_s12, 3  ;;  %s30_s22 = scalar_lea.vmem %s224_s2, %s159_s12  ;;  %vm46_vm0 = vcmask 64512   ;;  %vm81_vm10 = vcmask 58368   ;;  %s159_s12 = sphi %s185_s12, %s22_s12  }
   0x2   : > { %126 = vset.pattern.permute.xlu0 %v161_v0  ;;  %s28_s16 = scalar_lea.vmem %s223_s1, %s111_s13  ;;  %s24_s19 = scalar_lea.vmem %s222_s0, %s111_s13  ;;  %v112_v4 = vld [vmem:[%s30_s22] ss:$0 sm:$0xff] }
   0x3   : > { %v29_v1 = vld [vmem:[%s28_s16] sm:$0xff]  ;;  %s113_s23 = sshll.u32 %s159_s12, 1  ;;  %s22_s12 = sadd.s32 1, %s159_s12  }
   0x4   : > { %34 = vperm.xlu0 %126, %v29_v1   ;;  %v25_v2 = vld [vmem:[%s24_s19] sm:$0xff]  ;;  %s80_s24 = scalar_lea.vmem [#allocation2], %s113_s23  ;;  %p19_p0 = scmp.ge.s32.totalorder %s22_s12, 4  }
   0x5   : > { %v26_v3 = vmul.f32 1.442695, %v25_v2  ;;  %s162_s25 = smov (%p19_p0), [#allocation2]  }
   0x6   :  { %s88_s26 = sshll.u32 (%p19_p0), %s162_s25, 4  ;;  %s89_s26 = int_to_ptr.vmem [resolvable:$true] %s88_s26 }
   0x7   : > { %127 = vpow2.f32 %v26_v3  ;;  %s129_s27 = scalar_lea.vmem (%p19_p0), %s89_s26, 128  ;;  %p134_p2 = scmp.lt.s32.totalorder (%p19_p0), %s89_s26, %s89_s26 }
   0x8   :  { %p130_p1 = scmp.ne.s32.totalorder (%p19_p0), %s89_s26, %s129_s27  ;;  %p135_p3 = scmp.lt.s32.totalorder (%p19_p0), %s129_s27, %s129_s27 }
   0xa   :  { %p136_p4 = por (%p19_p0), %p135_p3, %p134_p2 }
   0xc   :  { %p137_p5 = pnand (%p19_p0), %p136_p4, %p130_p1 }
  0x11   : > { %v128_v6 = vpop.eup %127 }
  0x83   : > { %v35_v5 = vpop.permute.xlu0 %34 }
  0x84   : > { %v43_v7 = vmul.f32 %v112_v4, %v35_v5 }
  0x86   : > { %vm44_vm1 = vcmp.gt.f32.partialorder %v43_v7, 0.5 }
  0x87   : > { %v45_v8 = vsel %vm44_vm1, %v128_v6, 0.0 }
  0x88   : > { %v47_v9 = vsel %vm46_vm0, %v45_v8, -inf  ;;  %vm73_vm6 = vcmp.gt.f32.partialorder %v45_v8, 0.05 }
  0x89   : > { %48 = vmax.xlane.f32.xlu0 %v47_v9  ;;  %v56_v13 = vrot.slane %v47_v9, 4 }
  0x8b   : > { %v57_v14 = vmax.f32 %v47_v9, %v56_v13 }
  0x8d   : > { %v58_v15 = vrot.slane %v57_v14, 2 }
  0x8f   : > { %v59_v16 = vmax.f32 %v57_v14, %v58_v15 }
  0x91   : > { %v60_v17 = vrot.slane %v59_v16, 1 }
  0x93   : > { %v61_v18 = vmax.f32 %v59_v16, %v60_v17 }
  0x95   : > { %vm62_vm3 = vcmp.ge.f32.partialorder %v45_v8, %v61_v18 }
  0x96   : > { %v63_v19 = vsel %vm62_vm3, -1.0, %v45_v8 }
  0x97   : > { %v64_v20 = vsel %vm46_vm0, %v63_v19, -inf }
  0x98   : > { %v65_v21 = vrot.slane %v64_v20, 4 }
  0x9a   : > { %v66_v22 = vmax.f32 %v64_v20, %v65_v21 }
  0x9c   : > { %v67_v23 = vrot.slane %v66_v22, 2 }
  0x9e   : > { %v68_v24 = vmax.f32 %v66_v22, %v67_v23 }
  0xa0   : > { %v69_v25 = vrot.slane %v68_v24, 1 }
  0xa2   : > { %v70_v26 = vmax.f32 %v68_v24, %v69_v25 }
  0xa4   : > { %vm71_vm5 = vcmp.ge.f32.partialorder %v45_v8, %v70_v26 }
 0x116   : > { %v49_v10 = vpop.xlane.xlu0 %48 }
 0x117   : > { %vm50_vm2 = vcmp.ge.f32.partialorder %v45_v8, %v49_v10 }
 0x118   : > { %v51_v11 = vsel %vm50_vm2, -1.0, %v45_v8 }
 0x119   : > { %v52_v12 = vsel %vm46_vm0, %v51_v11, -inf }
 0x11a   : > { %53 = vmax.xlane.f32.xlu1 %v52_v12 }
 0x1a7   : > { %v54_v27 = vpop.xlane.xlu1 %53 }
 0x1a8   : > { %vm55_vm4 = vcmp.ge.f32.partialorder %v45_v8, %v54_v27 }
 0x1a9   : > { %vm72_vm7 = vmand %vm55_vm4, %vm71_vm5  ;;  %21 = sbr.rel (!%p19_p0) target bundleno = 1 (0x1), region = 43 }
 0x1aa   : > { %vm74_vm8 = vmand %vm72_vm7, %vm73_vm6 }
 0x1ab   : > { %vm75_vm9 = vmand %vm74_vm8, %vm44_vm1 }
 0x1ac   : > { %vm76_vm11 = vmpackc.low %vm75_vm9, %vm75_vm9 }
 0x1ad   : > { %vm77_vm12 = vmpackc.even %vm76_vm11, %vm76_vm11 }
 0x1ae   : > { %v78_v28 = vsel %vm77_vm12, 16843009, %v161_v0 }
 0x1af   : > { %82 = vst.msk [vmem:[%s80_s24] sm:$0x3] %vm81_vm10, %v78_v28 }
 0x1b0   :  { %140 = shalt.err (!%p137_p5)
}
 0x1b1   :  { %s141_s30 = scalar_lea.hbm %s225_s3, 128 }
 0x1b2   :  { %p142_p6 = scmp.ne.s32.totalorder %s225_s3, %s141_s30  ;;  %p145_p7 = scmp.lt.u32.totalorder %s141_s30, %s225_s3 }
 0x1b4   :  { %p147_p8 = pnand %p145_p7, %p142_p6 }
 0x1b6   :  { %150 = shalt.err (!%p147_p8)
}
 0x1b7   :  { %s163_s0 = smov 32   ;;  %s164_s1 = smov 2  }
 0x1b8   :  { %94 = dma.vmem_to_hbm [thread:$0]  %s89_s26, 128, %s225_s3, [#allocation3], %s163_s0, %s163_s0, %s164_s1  }
 0x1b9   :  { %155 = dma.done.wait [#allocation3], 128  }
 0x1ba   :  { %156 = vsyncadd [#allocation3], 4294967168 }
 0x1bb   :  { %98 = vsyncpa [#allocation3], 1 }

</bundles_post_ra>
